<compile_context>
chip_gen: v6e
topology: v6e:2x2x1
jax: 0.10.0
libtpu: 0.0.40
codegen_flags: <defaults>
</compile_context>

<pallas_src>
import jax
import jax.numpy as jnp
from jax.experimental import pallas as pl
from jax.experimental.pallas import tpu as pltpu


def _probe_kernel(x_ref, w_ref, b_ref, o_ref, acc_ref):
    # x_ref : (TM, TK) native dtype (streamed, double-buffered)
    # w_ref : (1, TK)  f32 (re-fetched only when the K block index changes)
    # b_ref : (1, 1)   f32 scalar in SMEM
    # o_ref : (TM, 1)  output tile (written once, on the last K step)
    # acc_ref: (TM, 1) f32 VMEM scratch accumulator (persists across K steps)
    k = pl.program_id(1)

    @pl.when(k == 0)
    def _init():
        acc_ref[...] = jnp.zeros_like(acc_ref)

    x = x_ref[...].astype(jnp.float32)        # cast in-kernel: bf16 streams half the HBM bytes
    w = w_ref[...]                            # (1, TK), sublane-broadcast in the VPU op
    acc_ref[...] += jnp.sum(x * w, axis=-1, keepdims=True)   # VPU mul + XLU lane reduce

    @pl.when(k == pl.num_programs(1) - 1)
    def _finalize():
        o_ref[...] = (acc_ref[...] + b_ref[0, 0]).astype(o_ref.dtype)


def _round_up(n: int, m: int) -> int:
    return ((n + m - 1) // m) * m


def _vmem_budget_bytes() -> int:
    """Per-generation VMEM budget for this pallas_call (also used as vmem_limit_bytes)."""
    try:
        cap = int(pltpu.get_tpu_info().vmem_capacity_bytes)
    except Exception:
        cap = 64 * 1024 * 1024   # conservative fallback = v7x physical VMEM
    # ~2/3 of physical: ~41 MiB on v7x (64 MiB phys), ~83 MiB on v5e/v6e (128 MiB
    # phys).  Leaves headroom for Mosaic-internal scratch / semaphores.
    return min((cap * 2) // 3, 96 * 1024 * 1024)


def _choose_tiles(batch: int, two_h: int, itemsize: int, budget_bytes: int):
    """Pick (TM, TK) so the per-step VMEM footprint fits the budget and each
    x tile is big enough (~8-16 MiB) to amortize the ~0.35us grid-step cost."""
    # Sublane packing of the streamed dtype: 8 rows f32, 16 bf16, 32 int8/fp8.
    pack = max(8, 32 // itemsize)
    # Per-element VMEM model:
    #   2 * itemsize   double-buffered native-dtype x tile
    # + 4              f32 cast of the tile (worst case: materialized)
    # + 4              f32 product temp before the lane reduction
    bytes_per_elem = 2 * itemsize + 8
    max_tile_elems = budget_bytes // bytes_per_elem
    target_elems = (16 * 1024 * 1024) // itemsize   # aim for ~16 MiB of x per tile
    tile_elems = max(pack * 128, min(target_elems, max_tile_elems))

    if tile_elems >= pack * two_h or two_h % 128 != 0:
        # Common case: whole (2H) rows per tile.  Non-128-multiple 2H (toy
        # sizes) also lands here since its K axis cannot be tiled lane-dense.
        tk = two_h
        tm = max(pack, (tile_elems // two_h // pack) * pack)
    else:
        # Rows too wide for the budget: also tile the reduction (2H) axis so TM
        # stays at 512 rows instead of collapsing to tiny-row tiles.
        tm = max(pack, min(512, _round_up(batch, pack)))
        tk = max(128, ((tile_elems // tm) // 128) * 128)
        while tk > 128 and two_h % tk != 0:   # keep TK an exact divisor of 2H
            tk -= 128
        if two_h % tk != 0:
            tk = 128
    tm = min(tm, _round_up(batch, pack))

    # v7x megacore balance: if the whole batch fits one tile but splitting it
    # still leaves >= ~2 MiB of x per tile, use two B-steps so both TensorCores
    # get work (harmless on single-TC v5e/v6e).
    half_rows = _round_up(-(-batch // 2), pack)
    if tm >= batch and half_rows * two_h * itemsize >= 2 * 1024 * 1024:
        tm = half_rows
    return tm, tk


def logistic_regression_probe_forward(x, weight, bias):
    """LogisticRegressionProbe.forward for input_format='BLH'.

    x: (B, L=2, H) float dtype; weight: (1, 2H); bias: (1,)  ->  (B, 1)
    """
    B, L, H = x.shape
    assert L == 2, "LogisticRegressionProbe expects L == 2 (lin in_features = 2*H)"
    two_h = L * H

    # _swap_hidden_and_last is the identity perm for 3-D BLH input; the flatten
    # matches torch's .reshape(x.size(0), -1). Keep native dtype: cast in-kernel.
    x_flat = x.reshape(B, two_h)
    w = jnp.asarray(weight, jnp.float32).reshape(1, two_h)
    b = jnp.asarray(bias, jnp.float32).reshape(1, 1)

    itemsize = x_flat.dtype.itemsize
    budget = _vmem_budget_bytes()
    tm, tk = _choose_tiles(B, two_h, itemsize, budget)
    n_b = -(-B // tm)
    n_k = -(-two_h // tk)          # tk divides two_h (or equals it) by construction
    grid = (n_b, n_k)
    # Output dtype follows x (torch nn.Linear with matching param/input dtypes);
    # accumulation is always f32.
    out_dtype = x.dtype

    cost = pl.CostEstimate(
        flops=2 * B * two_h,
        transcendentals=0,
        bytes_accessed=(B * two_h * itemsize
                        + two_h * 4
                        + B * jnp.dtype(out_dtype).itemsize
                        + 4),
    )

    out = pl.pallas_call(
        _probe_kernel,
        out_shape=jax.ShapeDtypeStruct((B, 1), out_dtype),
        grid=grid,
        in_specs=[
            # streamed activation tiles (double-buffered by the pipeline)
            pl.BlockSpec((tm, tk), lambda i, k: (i, k)),
            # weight: block index only depends on k -> re-fetched per K step only
            pl.BlockSpec((1, tk), lambda i, k: (0, k)),
            # bias: scalar in SMEM (no VMEM tile padding / per-step DMA)
            pl.BlockSpec((1, 1), lambda i, k: (0, 0),
                         memory_space=pltpu.MemorySpace.SMEM),
        ],
        out_specs=pl.BlockSpec((tm, 1), lambda i, k: (i, 0)),
        scratch_shapes=[pltpu.VMEM((tm, 1), jnp.float32)],
        compiler_params=pltpu.CompilerParams(
            # B tiles shard across v7x's 2 TCs; 2H is a reduction axis.
            dimension_semantics=("parallel", "arbitrary"),
            # Explicit per-generation limit so TM can grow past the default
            # scoped VMEM (16 MiB v5e / 32 MiB v6e,v7x).
            vmem_limit_bytes=int(budget),
        ),
        cost_estimate=cost,
    )(x_flat, w, b)
    return out


if __name__ == "__main__":
    # Small shapes consistent with the module: B=8, L=2 (fixed), H=outer_hidden_dim=32.
    B, L, H = 8, 2, 32

    key = jax.random.PRNGKey(0)
    kx, kw, kb = jax.random.split(key, 3)

    x = jax.random.normal(kx, (B, L, H), dtype=jnp.float32)

    # Deterministic param init mimicking nn.Linear(2H, 1): U(-1/sqrt(2H), 1/sqrt(2H)).
    fan_in = 2 * H
    bound = 1.0 / (fan_in ** 0.5)
    weight = jax.random.uniform(kw, (1, 2 * H), minval=-bound, maxval=bound,
                                dtype=jnp.float32)
    bias = jax.random.uniform(kb, (1,), minval=-bound, maxval=bound,
                              dtype=jnp.float32)

    out = logistic_regression_probe_forward(x, weight, bias)
    out = jax.block_until_ready(out)

    ref = x.reshape(B, 2 * H) @ weight.T + bias
    assert out.shape == (B, 1)
    assert jnp.allclose(out, ref, atol=1e-5, rtol=1e-5)

    # Second check: batch not a multiple of the sublane pack (partial last block)
    # and a lane-dense 2H, to exercise the padded-tile path.
    B2, H2 = 10, 64
    k2x, k2w, k2b = jax.random.split(jax.random.PRNGKey(1), 3)
    x2 = jax.random.normal(k2x, (B2, 2, H2), dtype=jnp.float32)
    bound2 = 1.0 / ((2 * H2) ** 0.5)
    w2 = jax.random.uniform(k2w, (1, 2 * H2), minval=-bound2, maxval=bound2,
                            dtype=jnp.float32)
    b2 = jax.random.uniform(k2b, (1,), minval=-bound2, maxval=bound2,
                            dtype=jnp.float32)
    out2 = jax.block_until_ready(logistic_regression_probe_forward(x2, w2, b2))
    ref2 = x2.reshape(B2, 2 * H2) @ w2.T + b2
    assert out2.shape == (B2, 1)
    assert jnp.allclose(out2, ref2, atol=1e-5, rtol=1e-5)

    print("KERNEL_OK")
</pallas_src>

<mosaic_0001>
module attributes {stable_mosaic.version = 11 : i64} {
  func.func @_probe_kernel(%arg0: i32, %arg1: i32, %arg2: memref<8x64xf32, #tpu.memory_space<vmem>>, %arg3: memref<1x64xf32, #tpu.memory_space<vmem>>, %arg4: memref<1x1xf32, #tpu.memory_space<smem>>, %arg5: memref<8x1xf32, #tpu.memory_space<vmem>>, %arg6: memref<8x1xf32, #tpu.memory_space<vmem>>) attributes {dimension_semantics = [#tpu.dimension_semantics<parallel>, #tpu.dimension_semantics<arbitrary>], iteration_bounds = array<i64: 1, 1>, scalar_prefetch = 0 : i64, scratch_operands = 1 : i64, tpu.core_type = #tpu.core_type<tc>, window_params = [{transform_indices = @transform_0, window_bounds = array<i64: 8, 64>}, {transform_indices = @transform_1, window_bounds = array<i64: 1, 64>}, {transform_indices = @transform_2, window_bounds = array<i64: 1, 1>}, {transform_indices = @transform_3, window_bounds = array<i64: 8, 1>}]} {
    %c0_i32 = arith.constant 0 : i32
    %0 = arith.cmpi eq, %arg1, %c0_i32 : i32
    %1 = arith.extui %0 : i1 to i32
    %c0_i32_0 = arith.constant 0 : i32
    %2 = arith.cmpi ne, %1, %c0_i32_0 : i32
    scf.if %2 {
      %cst_10 = arith.constant 0.000000e+00 : f32
      %15 = vector.broadcast %cst_10 : f32 to vector<8x1xf32>
      %c0_11 = arith.constant 0 : index
      %c0_12 = arith.constant 0 : index
      %16 = vector.load %arg6[%c0_11, %c0_12] : memref<8x1xf32, #tpu.memory_space<vmem>>, vector<8x1xf32>
      tpu.vector_store %arg6[%c0_11, %c0_12], %15 {strides = array<i32>} : memref<8x1xf32, #tpu.memory_space<vmem>>, vector<8x1xf32>,
    } else {
    }
    %c0 = arith.constant 0 : index
    %c0_1 = arith.constant 0 : index
    %3 = vector.load %arg2[%c0, %c0_1] : memref<8x64xf32, #tpu.memory_space<vmem>>, vector<8x64xf32>
    %c0_2 = arith.constant 0 : index
    %c0_3 = arith.constant 0 : index
    %4 = vector.load %arg3[%c0_2, %c0_3] : memref<1x64xf32, #tpu.memory_space<vmem>>, vector<1x64xf32>
    %c0_4 = arith.constant 0 : index
    %c0_5 = arith.constant 0 : index
    %5 = vector.load %arg6[%c0_4, %c0_5] : memref<8x1xf32, #tpu.memory_space<vmem>>, vector<8x1xf32>
    %6 = vector.broadcast %4 : vector<1x64xf32> to vector<8x64xf32>
    %7 = arith.mulf %3, %6 : vector<8x64xf32>
    %cst = arith.constant dense<0.000000e+00> : vector<8xf32>
    %8 = vector.multi_reduction <add>, %7, %cst [1] : vector<8x64xf32> to vector<8xf32>
    %9 = vector.shape_cast %8 : vector<8xf32> to vector<8x1xf32>
    %10 = arith.addf %5, %9 : vector<8x1xf32>
    %c0_6 = arith.constant 0 : index
    %c0_7 = arith.constant 0 : index
    %11 = vector.load %arg6[%c0_6, %c0_7] : memref<8x1xf32, #tpu.memory_space<vmem>>, vector<8x1xf32>
    tpu.vector_store %arg6[%c0_6, %c0_7], %10 {strides = array<i32>} : memref<8x1xf32, #tpu.memory_space<vmem>>, vector<8x1xf32>,
    %c0_i32_8 = arith.constant 0 : i32
    %12 = arith.cmpi eq, %arg1, %c0_i32_8 : i32
    %13 = arith.extui %12 : i1 to i32
    %c0_i32_9 = arith.constant 0 : i32
    %14 = arith.cmpi ne, %13, %c0_i32_9 : i32
    scf.if %14 {
      %c0_10 = arith.constant 0 : index
      %c0_11 = arith.constant 0 : index
      %15 = vector.load %arg6[%c0_10, %c0_11] : memref<8x1xf32, #tpu.memory_space<vmem>>, vector<8x1xf32>
      %c0_12 = arith.constant 0 : index
      %c0_13 = arith.constant 0 : index
      %16 = memref.load %arg4[%c0_12, %c0_13] : memref<1x1xf32, #tpu.memory_space<smem>>
      %17 = vector.broadcast %16 : f32 to vector<8x1xf32>
      %18 = arith.addf %15, %17 : vector<8x1xf32>
      %c0_14 = arith.constant 0 : index
      %c0_15 = arith.constant 0 : index
      %19 = vector.load %arg5[%c0_14, %c0_15] : memref<8x1xf32, #tpu.memory_space<vmem>>, vector<8x1xf32>
      tpu.vector_store %arg5[%c0_14, %c0_15], %18 {strides = array<i32>} : memref<8x1xf32, #tpu.memory_space<vmem>>, vector<8x1xf32>,
    } else {
    }
    return
  }
  func.func @transform_0(%arg0: i32, %arg1: i32) -> (i32, i32) {
    %c0_i32 = arith.constant 0 : i32
    return %arg0, %arg1 : i32, i32
  }
  func.func @transform_1(%arg0: i32, %arg1: i32) -> (i32, i32) {
    %c0_i32 = arith.constant 0 : i32
    %c0_i32_0 = arith.constant 0 : i32
    return %c0_i32, %arg1 : i32, i32
  }
  func.func @transform_2(%arg0: i32, %arg1: i32) -> (i32, i32) {
    %c0_i32 = arith.constant 0 : i32
    %c0_i32_0 = arith.constant 0 : i32
    %c0_i32_1 = arith.constant 0 : i32
    return %c0_i32, %c0_i32_0 : i32, i32
  }
  func.func @transform_3(%arg0: i32, %arg1: i32) -> (i32, i32) {
    %c0_i32 = arith.constant 0 : i32
    %c0_i32_0 = arith.constant 0 : i32
    return %arg0, %c0_i32 : i32, i32
  }
}

</mosaic_0001>

<bundles_post_ra>
// kernel: tpu_custom_call.1
= control target key start
LH: loop header
LB: loop body
LE: loop exit
PB: predicated region body
PF: predicated region fallthrough
CT: control target
= control target key end

     0   :  { %9 = vsyncpa [#allocation5], 0  ;;  %s88_s12 = smov [#allocation4]   ;;  %s125_s0 = inlined_call_operand.hbm [shape: f32[8,64], index: 0, kind: input, shape index: {}]   ;;  %s126_s1 = inlined_call_operand.vmem [shape: f32[1,64], index: 1, kind: input, shape index: {}]   ;;  %s127_s2 = inlined_call_operand.<no memory space> [shape: f32[1,1], index: 2, kind: input, shape index: {}]   ;;  %s128_s3 = inlined_call_operand.vmem [shape: f32[8,1], index: 3, kind: output, shape index: {}]  }
   0x1   :  { %s16_s13 = sshll.u32 %s88_s12, 4  ;;  %s17_s13 = int_to_ptr.vmem [resolvable:$true] %s16_s13 }
   0x2   :  { %s74_s14 = scalar_lea.vmem %s17_s13, 128  ;;  %p79_p1 = scmp.lt.s32.totalorder %s17_s13, %s17_s13 }
   0x3   :  { %p75_p0 = scmp.ne.s32.totalorder %s17_s13, %s74_s14  ;;  %p80_p2 = scmp.lt.s32.totalorder %s74_s14, %s74_s14 }
   0x5   :  { %p81_p3 = por %p80_p2, %p79_p1 }
   0x7   :  { %p82_p4 = pnand %p81_p3, %p75_p0 }
   0x9   :  { %85 = shalt.err (!%p82_p4)
}
   0xa   :  { %19 = dma.hbm_to_vmem [thread:$0]  %s125_s0, 128, %s17_s13, [#allocation5]  }
   0xb   :  { %86 = dma.done.wait [#allocation5], 128  }
   0xc   :  { %87 = vsyncadd [#allocation5], 4294967168  ;;  %vm31_vm0 = vcmask 7168   ;;  %v89_v0 = vmov 0.0   ;;  %v33_v1 = vld [vmem:[#allocation4] sm:$0xff]  ;;  %vm43_vm1 = vcmask 523264   ;;  %v55_v8 = vstv %s127_s2 }
   0xd   :  { %32 = vst.msk [vmem:[#allocation2] sm:$0xff] %vm31_vm0, %v89_v0  ;;  %v63_v2 = vld [vmem:[%s126_s1] ss:$0 sm:$0xff] }
   0xe   :  { %v42_v3 = vmul.f32 %v63_v2, %v33_v1 }
  0x10   :  { %v44_v4 = vsel %vm43_vm1, %v42_v3, 0.0 }
  0x11   :  { %45 = vadd.xlane.f32.xlu0 %v44_v4 }
  0x14   :  { %v35_v5 = vld [vmem:[#allocation2] sm:$0xff] }
  0x9a   :  { %v46_v6 = vpop.xlane.xlu0 %45 }
  0x9b   :  { %v47_v7 = vadd.f32 %v46_v6, %v35_v5 }
  0x9d   :  { %49 = vst.msk [vmem:[#allocation2] sm:$0xff] %vm31_vm0, %v47_v7 }
  0xa4   :  { %v53_v9 = vld [vmem:[#allocation2] sm:$0xff] }
  0xa5   :  { %v56_v10 = vadd.f32 %v55_v8, %v53_v9 }
  0xa7   :  { %57 = vst.msk [vmem:[%s128_s3] sm:$0xff] %vm31_vm0, %v56_v10 }
  0xa8   :  { %62 = vsyncpa [#allocation5], 1 }

</bundles_post_ra>
